<compile_context>
chip_gen: v5e
topology: v5e:2x2
jax: 0.10.0
libtpu: 0.0.40
codegen_flags: <defaults>
</compile_context>

<pallas_src>
import functools

import jax
import jax.numpy as jnp
from jax.experimental import pallas as pl
from jax.experimental.pallas import tpu as pltpu

LEAKY_SLOPE = 0.01
BN_EPS = 1e-5


def _leaky_relu(x):
    return jnp.where(x > 0, x, LEAKY_SLOPE * x)


def critic_kernel(
    x_ref,    # [TB, S + 2A]  bf16, streamed per tile: [state | action | action_p2]
    w1_ref,   # [S, 128]      bf16, BN-folded fc1 weight (resident)
    b1_ref,   # [1, 128]      f32,  BN-folded fc1 bias   (resident)
    w2s_ref,  # [128, 128]    bf16, fc2 rows for xs      (resident)
    w2a_ref,  # [2A, 128]     bf16, fc2 rows for actions (resident)
    b2_ref,   # [1, 128]      f32                        (resident)
    w3_ref,   # [1, 128]      f32,  fc3 weight row       (resident)
    b3_ref,   # [1]           f32,  fc3 bias, SMEM scalar
    o_ref,    # [TB, 1]       f32
    *,
    state_size,
):
    x = x_ref[...]                       # bf16
    s = x[:, :state_size]                # [TB, S]
    a = x[:, state_size:]                # [TB, 2A]

    # fc1 (BatchNorm already folded into w1/b1 in the wrapper) + leaky_relu
    h1 = jnp.dot(s, w1_ref[...], preferred_element_type=jnp.float32) + b1_ref[...]
    h1 = _leaky_relu(h1)

    # fc2: concat([h1, a, a2]) @ W2 == h1 @ W2_s + [a|a2] @ W2_a  (exact split)
    h2 = (
        jnp.dot(h1.astype(jnp.bfloat16), w2s_ref[...],
                preferred_element_type=jnp.float32)
        + jnp.dot(a, w2a_ref[...], preferred_element_type=jnp.float32)
        + b2_ref[...]
    )
    h2 = _leaky_relu(h2)

    # fc3 (out_features = 1): VPU multiply + lane reduce; no transpose, no
    # N=1 MXU matmul.  Output volume is only 4*TB bytes.
    q = jnp.sum(h2 * w3_ref[...], axis=-1, keepdims=True) + b3_ref[0]
    o_ref[...] = q.astype(o_ref.dtype)


def critic_forward(state, action, action_p2, params, *, tb=128):
    B, S = state.shape

    s32 = state.astype(jnp.float32)

    # --- BatchNorm1d training-mode statistics over the WHOLE batch (never
    # per-tile), folded into fc1:  xs @ W1 + b1 == s @ W1' + b1'.
    mean = jnp.mean(s32, axis=0, keepdims=True)
    var = jnp.mean((s32 - mean) ** 2, axis=0, keepdims=True)     # biased var
    scale = params["bn_gamma"] * jax.lax.rsqrt(var + BN_EPS)     # [1, S]
    shift = params["bn_beta"] - mean * scale                     # [1, S]
    w1p = (scale.T * params["w1"]).astype(jnp.bfloat16)          # [S, 128]
    b1p = (params["b1"] + shift @ params["w1"]).astype(jnp.float32)

    w2s = params["w2_s"].astype(jnp.bfloat16)                    # [128, 128]
    w2a = params["w2_a"].astype(jnp.bfloat16)                    # [2A, 128]
    b2 = params["b2"].astype(jnp.float32)
    w3 = params["w3_row"].astype(jnp.float32)                    # [1, 128]
    b3 = params["b3"].astype(jnp.float32)                        # [1]

    # --- Single streamed operand per tile: [state | action | action_p2].
    x = jnp.concatenate(
        [s32, action.astype(jnp.float32), action_p2.astype(jnp.float32)], axis=1
    ).astype(jnp.bfloat16)                                       # [B, S + 2A]

    # Pad batch to a multiple of the tile.  Pad rows are garbage-in/garbage-out
    # (BN stats already use only the real batch) and get sliced away.
    n_tiles = pl.cdiv(B, tb)
    b_pad = n_tiles * tb
    if b_pad != B:
        x = jnp.pad(x, ((0, b_pad - B), (0, 0)))

    kernel = functools.partial(critic_kernel, state_size=S)

    def _tile(i):
        return (i, 0)

    def _resident(i):        # constant index -> weights stay in VMEM across steps
        return (0, 0)

    q_pad = pl.pallas_call(
        kernel,
        out_shape=jax.ShapeDtypeStruct((b_pad, 1), jnp.float32),
        grid=(n_tiles,),
        in_specs=[
            pl.BlockSpec((tb, x.shape[1]), _tile),     # streamed input tile
            pl.BlockSpec(w1p.shape, _resident),
            pl.BlockSpec(b1p.shape, _resident),
            pl.BlockSpec(w2s.shape, _resident),
            pl.BlockSpec(w2a.shape, _resident),
            pl.BlockSpec(b2.shape, _resident),
            pl.BlockSpec(w3.shape, _resident),
            pl.BlockSpec(memory_space=pltpu.MemorySpace.SMEM),   # b3 scalar
        ],
        out_specs=pl.BlockSpec((tb, 1), _tile),
        compiler_params=pltpu.CompilerParams(
            dimension_semantics=("parallel",)),        # 2x on v7x megacore
    )(x, w1p, b1p, w2s, w2a, b2, w3, b3)

    return q_pad[:B, :]


def init_params(key, state_size, action_size, hidden=128):
    """Deterministic parameter init mirroring Critic.reset_parameters()."""
    k1, k2, k3, kb1, kb2, kb3 = jax.random.split(key, 6)

    lim1 = 1.0 / jnp.sqrt(jnp.float32(hidden))   # fc1 hidden_init
    lim2 = 1.0 / jnp.sqrt(jnp.float32(hidden))   # fc2 hidden_init
    lim3 = 0.003                                 # fc3

    cat_size = hidden + 2 * action_size

    # Weights stored already transposed: [in, out]
    w1 = jax.random.uniform(k1, (state_size, hidden), jnp.float32, -lim1, lim1)
    w2 = jax.random.uniform(k2, (cat_size, hidden), jnp.float32, -lim2, lim2)
    w3 = jax.random.uniform(k3, (hidden, 1), jnp.float32, -lim3, lim3)

    b1 = jax.random.uniform(kb1, (1, hidden), jnp.float32,
                            -1.0 / jnp.sqrt(jnp.float32(state_size)),
                            1.0 / jnp.sqrt(jnp.float32(state_size)))
    b2 = jax.random.uniform(kb2, (1, hidden), jnp.float32,
                            -1.0 / jnp.sqrt(jnp.float32(cat_size)),
                            1.0 / jnp.sqrt(jnp.float32(cat_size)))
    b3 = jax.random.uniform(kb3, (1,), jnp.float32,
                            -1.0 / jnp.sqrt(jnp.float32(hidden)),
                            1.0 / jnp.sqrt(jnp.float32(hidden)))

    return {
        "bn_gamma": jnp.ones((1, state_size), jnp.float32),
        "bn_beta": jnp.zeros((1, state_size), jnp.float32),
        "w1": w1,
        "b1": b1,
        "w2_s": w2[:hidden, :],      # fc2 rows for xs
        "w2_a": w2[hidden:, :],      # fc2 rows for [action | action_p2]
        "b2": b2,
        "w3_row": w3.T,              # [1, 128]
        "b3": b3,                    # [1]
    }


def critic_reference(state, action, action_p2, params):
    """Pure-JAX f32 reference matching the PyTorch training-mode forward."""
    s = state.astype(jnp.float32)
    mean = jnp.mean(s, axis=0, keepdims=True)
    var = jnp.mean((s - mean) ** 2, axis=0, keepdims=True)
    xs = (s - mean) / jnp.sqrt(var + BN_EPS)
    xs = xs * params["bn_gamma"] + params["bn_beta"]
    h1 = _leaky_relu(xs @ params["w1"] + params["b1"])
    x = jnp.concatenate([h1, action, action_p2], axis=1)
    w2 = jnp.concatenate([params["w2_s"], params["w2_a"]], axis=0)
    h2 = _leaky_relu(x @ w2 + params["b2"])
    return h2 @ params["w3_row"].T + params["b3"]


if __name__ == "__main__":
    # Small but tiling-exercising shapes: two 128-row batch tiles.
    batch = 256
    state_size = 24
    action_size = 4

    key = jax.random.PRNGKey(0)
    kp, ks, ka, ka2 = jax.random.split(key, 4)

    params = init_params(kp, state_size, action_size)
    state = jax.random.normal(ks, (batch, state_size), jnp.float32)
    action = jax.random.normal(ka, (batch, action_size), jnp.float32)
    action_p2 = jax.random.normal(ka2, (batch, action_size), jnp.float32)

    q = critic_forward(state, action, action_p2, params, tb=128)
    jax.block_until_ready(q)

    q_ref = critic_reference(state, action, action_p2, params)
    assert q.shape == (batch, 1), q.shape
    # bf16 matmul operands -> tolerance loosened vs. the f32 reference.
    max_err = float(jnp.max(jnp.abs(q - q_ref)))
    assert max_err < 1e-2, max_err

    print("KERNEL_OK")
</pallas_src>

<mosaic_0001>
module attributes {stable_mosaic.version = 11 : i64} {
  func.func @critic_kernel(%arg0: i32, %arg1: memref<128x32xbf16, #tpu.memory_space<vmem>>, %arg2: memref<24x128xbf16, #tpu.memory_space<vmem>>, %arg3: memref<1x128xf32, #tpu.memory_space<vmem>>, %arg4: memref<128x128xbf16, #tpu.memory_space<vmem>>, %arg5: memref<8x128xbf16, #tpu.memory_space<vmem>>, %arg6: memref<1x128xf32, #tpu.memory_space<vmem>>, %arg7: memref<1x128xf32, #tpu.memory_space<vmem>>, %arg8: memref<1xf32, #tpu.memory_space<smem>>, %arg9: memref<128x1xf32, #tpu.memory_space<vmem>>) attributes {dimension_semantics = [#tpu.dimension_semantics<parallel>], iteration_bounds = array<i64: 2>, scalar_prefetch = 0 : i64, scratch_operands = 0 : i64, tpu.core_type = #tpu.core_type<tc>, window_params = [{transform_indices = @transform_0, window_bounds = array<i64: 128, 32>}, {pipeline_mode = #tpu.pipeline_mode<synchronous>, transform_indices = @transform_1, window_bounds = array<i64: 24, 128>}, {pipeline_mode = #tpu.pipeline_mode<synchronous>, transform_indices = @transform_2, window_bounds = array<i64: 1, 128>}, {pipeline_mode = #tpu.pipeline_mode<synchronous>, transform_indices = @transform_3, window_bounds = array<i64: 128, 128>}, {pipeline_mode = #tpu.pipeline_mode<synchronous>, transform_indices = @transform_4, window_bounds = array<i64: 8, 128>}, {pipeline_mode = #tpu.pipeline_mode<synchronous>, transform_indices = @transform_5, window_bounds = array<i64: 1, 128>}, {pipeline_mode = #tpu.pipeline_mode<synchronous>, transform_indices = @transform_6, window_bounds = array<i64: 1, 128>}, {transform_indices = @transform_7, window_bounds = array<i64: 1>}, {transform_indices = @transform_8, window_bounds = array<i64: 128, 1>}]} {
    %c0 = arith.constant 0 : index
    %c0_0 = arith.constant 0 : index
    %0 = vector.load %arg1[%c0, %c0_0] : memref<128x32xbf16, #tpu.memory_space<vmem>>, vector<128x32xbf16>
    %1 = vector.extract_strided_slice %0 {offsets = [0, 0], sizes = [128, 24], strides = [1, 1]} : vector<128x32xbf16> to vector<128x24xbf16>
    %2 = vector.extract_strided_slice %0 {offsets = [0, 24], sizes = [128, 8], strides = [1, 1]} : vector<128x32xbf16> to vector<128x8xbf16>
    %c0_1 = arith.constant 0 : index
    %c0_2 = arith.constant 0 : index
    %3 = vector.load %arg2[%c0_1, %c0_2] : memref<24x128xbf16, #tpu.memory_space<vmem>>, vector<24x128xbf16>
    %cst = arith.constant dense<0.000000e+00> : vector<128x128xf32>
    %4 = tpu.matmul %1, %3, %cst {dimension_numbers = #tpu.dot_dimension_numbers<[1], [0], [0], [1], [0, 0, 1, 1], [], []>} : vector<128x24xbf16>, vector<24x128xbf16>, vector<128x128xf32> -> vector<128x128xf32>
    %c0_3 = arith.constant 0 : index
    %c0_4 = arith.constant 0 : index
    %5 = vector.load %arg3[%c0_3, %c0_4] : memref<1x128xf32, #tpu.memory_space<vmem>>, vector<1x128xf32>
    %6 = vector.broadcast %5 : vector<1x128xf32> to vector<128x128xf32>
    %7 = arith.addf %4, %6 : vector<128x128xf32>
    %cst_5 = arith.constant 0.000000e+00 : f32
    %8 = vector.broadcast %cst_5 : f32 to vector<128x128xf32>
    %9 = arith.cmpf ogt, %7, %8 : vector<128x128xf32>
    %cst_6 = arith.constant 0.00999999977 : f32
    %10 = vector.broadcast %cst_6 : f32 to vector<128x128xf32>
    %11 = arith.mulf %10, %7 : vector<128x128xf32>
    %12 = arith.select %9, %7, %11 : vector<128x128xi1>, vector<128x128xf32>
    %13 = arith.truncf %12 : vector<128x128xf32> to vector<128x128xbf16>
    %c0_7 = arith.constant 0 : index
    %c0_8 = arith.constant 0 : index
    %14 = vector.load %arg4[%c0_7, %c0_8] : memref<128x128xbf16, #tpu.memory_space<vmem>>, vector<128x128xbf16>
    %cst_9 = arith.constant dense<0.000000e+00> : vector<128x128xf32>
    %15 = tpu.matmul %13, %14, %cst_9 {dimension_numbers = #tpu.dot_dimension_numbers<[1], [0], [0], [1], [0, 0, 1, 1], [], []>} : vector<128x128xbf16>, vector<128x128xbf16>, vector<128x128xf32> -> vector<128x128xf32>
    %c0_10 = arith.constant 0 : index
    %c0_11 = arith.constant 0 : index
    %16 = vector.load %arg5[%c0_10, %c0_11] : memref<8x128xbf16, #tpu.memory_space<vmem>>, vector<8x128xbf16>
    %cst_12 = arith.constant dense<0.000000e+00> : vector<128x128xf32>
    %17 = tpu.matmul %2, %16, %cst_12 {dimension_numbers = #tpu.dot_dimension_numbers<[1], [0], [0], [1], [0, 0, 1, 1], [], []>} : vector<128x8xbf16>, vector<8x128xbf16>, vector<128x128xf32> -> vector<128x128xf32>
    %18 = arith.addf %15, %17 : vector<128x128xf32>
    %c0_13 = arith.constant 0 : index
    %c0_14 = arith.constant 0 : index
    %19 = vector.load %arg6[%c0_13, %c0_14] : memref<1x128xf32, #tpu.memory_space<vmem>>, vector<1x128xf32>
    %20 = vector.broadcast %19 : vector<1x128xf32> to vector<128x128xf32>
    %21 = arith.addf %18, %20 : vector<128x128xf32>
    %cst_15 = arith.constant 0.000000e+00 : f32
    %22 = vector.broadcast %cst_15 : f32 to vector<128x128xf32>
    %23 = arith.cmpf ogt, %21, %22 : vector<128x128xf32>
    %cst_16 = arith.constant 0.00999999977 : f32
    %24 = vector.broadcast %cst_16 : f32 to vector<128x128xf32>
    %25 = arith.mulf %24, %21 : vector<128x128xf32>
    %26 = arith.select %23, %21, %25 : vector<128x128xi1>, vector<128x128xf32>
    %c0_17 = arith.constant 0 : index
    %c0_18 = arith.constant 0 : index
    %27 = vector.load %arg7[%c0_17, %c0_18] : memref<1x128xf32, #tpu.memory_space<vmem>>, vector<1x128xf32>
    %28 = vector.broadcast %27 : vector<1x128xf32> to vector<128x128xf32>
    %29 = arith.mulf %26, %28 : vector<128x128xf32>
    %cst_19 = arith.constant dense<0.000000e+00> : vector<128xf32>
    %30 = vector.multi_reduction <add>, %29, %cst_19 [1] : vector<128x128xf32> to vector<128xf32>
    %31 = vector.shape_cast %30 : vector<128xf32> to vector<128x1xf32>
    %c0_20 = arith.constant 0 : index
    %32 = memref.load %arg8[%c0_20] : memref<1xf32, #tpu.memory_space<smem>>
    %33 = vector.broadcast %32 : f32 to vector<128x1xf32>
    %34 = arith.addf %31, %33 : vector<128x1xf32>
    %c0_21 = arith.constant 0 : index
    %c0_22 = arith.constant 0 : index
    %35 = vector.load %arg9[%c0_21, %c0_22] : memref<128x1xf32, #tpu.memory_space<vmem>>, vector<128x1xf32>
    tpu.vector_store %arg9[%c0_21, %c0_22], %34 {strides = array<i32>} : memref<128x1xf32, #tpu.memory_space<vmem>>, vector<128x1xf32>,
    return
  }
  func.func @transform_0(%arg0: i32) -> (i32, i32) {
    %c0_i32 = arith.constant 0 : i32
    %c0_i32_0 = arith.constant 0 : i32
    return %arg0, %c0_i32 : i32, i32
  }
  func.func @transform_1(%arg0: i32) -> (i32, i32) {
    %c0_i32 = arith.constant 0 : i32
    %c0_i32_0 = arith.constant 0 : i32
    %c0_i32_1 = arith.constant 0 : i32
    return %c0_i32, %c0_i32_0 : i32, i32
  }
  func.func @transform_2(%arg0: i32) -> (i32, i32) {
    %c0_i32 = arith.constant 0 : i32
    %c0_i32_0 = arith.constant 0 : i32
    %c0_i32_1 = arith.constant 0 : i32
    return %c0_i32, %c0_i32_0 : i32, i32
  }
  func.func @transform_3(%arg0: i32) -> (i32, i32) {
    %c0_i32 = arith.constant 0 : i32
    %c0_i32_0 = arith.constant 0 : i32
    %c0_i32_1 = arith.constant 0 : i32
    return %c0_i32, %c0_i32_0 : i32, i32
  }
  func.func @transform_4(%arg0: i32) -> (i32, i32) {
    %c0_i32 = arith.constant 0 : i32
    %c0_i32_0 = arith.constant 0 : i32
    %c0_i32_1 = arith.constant 0 : i32
    return %c0_i32, %c0_i32_0 : i32, i32
  }
  func.func @transform_5(%arg0: i32) -> (i32, i32) {
    %c0_i32 = arith.constant 0 : i32
    %c0_i32_0 = arith.constant 0 : i32
    %c0_i32_1 = arith.constant 0 : i32
    return %c0_i32, %c0_i32_0 : i32, i32
  }
  func.func @transform_6(%arg0: i32) -> (i32, i32) {
    %c0_i32 = arith.constant 0 : i32
    %c0_i32_0 = arith.constant 0 : i32
    %c0_i32_1 = arith.constant 0 : i32
    return %c0_i32, %c0_i32_0 : i32, i32
  }
  func.func @transform_7(%arg0: i32) -> i32 {
    %c0_i32 = arith.constant 0 : i32
    %c0_i32_0 = arith.constant 0 : i32
    return %c0_i32 : i32
  }
  func.func @transform_8(%arg0: i32) -> (i32, i32) {
    %c0_i32 = arith.constant 0 : i32
    %c0_i32_0 = arith.constant 0 : i32
    return %arg0, %c0_i32 : i32, i32
  }
}

</mosaic_0001>

<bundles_post_ra>
// kernel: tpu_custom_call.1
= control target key start
LH: loop header
LB: loop body
LE: loop exit
PB: predicated region body
PF: predicated region fallthrough
CT: control target
= control target key end

     0   :  { %s1124_s29 = smov 0   ;;  %s1293_s0 = inlined_call_operand.vmem [shape: bf16[256,32], index: 0, kind: input, shape index: {}]   ;;  %s1294_s1 = inlined_call_operand.vmem [shape: bf16[24,128], index: 1, kind: input, shape index: {}]   ;;  %s1295_s2 = inlined_call_operand.vmem [shape: f32[1,128], index: 2, kind: input, shape index: {}]   ;;  %s1296_s3 = inlined_call_operand.vmem [shape: bf16[128,128], index: 3, kind: input, shape index: {}]   ;;  %s1297_s4 = inlined_call_operand.vmem [shape: bf16[8,128], index: 4, kind: input, shape index: {}]   ;;  %s1298_s5 = inlined_call_operand.vmem [shape: f32[1,128], index: 5, kind: input, shape index: {}]   ;;  %s1299_s6 = inlined_call_operand.vmem [shape: f32[1,128], index: 6, kind: input, shape index: {}]   ;;  %s1300_s7 = inlined_call_operand.<no memory space> [shape: f32[1], index: 7, kind: input, shape index: {}]   ;;  %s1301_s8 = inlined_call_operand.vmem [shape: f32[256,1], index: 8, kind: output, shape index: {}]  }
   0x1   :  { %13 = sst [smem:[#allocation2]] %s1300_s7 }
   0x2 LB: > { %s935_s30 = sadd.s32 4294967295, %s1073_s29   ;;  %p939_p0 = scmp.ge.s32.totalorder %s1073_s29, 1  ;;  %s1073_s29 = sphi %s1124_s29, %s19_s29  }
   0x3   : > { %p264_p1 = scmp.lt.s32.totalorder %s1073_s29, 3 }
   0x5   : > { %p265_p2 = pnand %p939_p0, %p264_p1 }
   0x6   : > { %s940_s7 = sshll.u32 (!%p265_p2), %s935_s30, 4  ;;  %s1075_s17 = smov (!%p265_p2), 104  }
   0x7   : > { %268 = sbr.rel (%p265_p2) target bundleno = 546 (0x222), region = 52  ;;  %p299_p3 = scmp.lt.s32.totalorder (!%p265_p2), %s940_s7, 31 }
   0x8   : > { %s844_s21 = sld [smem:[#allocation2]] (!%p265_p2) }
   0xc   : > { %v329_v0 = vld [vmem:[%s1294_s1 + $0x8] sm:$0xf]  ;;  %vm408_vm0 = vcmask 1043456   ;;  %s1303_s7 = smov (!%p299_p3, %s940_s7), 31  ;;  %v1038_v4 = vld [vmem:[%s1294_s1] sm:$0xff]  ;;  %vm383_vm1 = vcmask 195584  }
   0xd   : > { %v379_v1 = vunpack.c.l.b16 %v329_v0  ;;  %s941_s11 = sshll.u32 %s1303_s7, 2  ;;  %v1046_v12 = vld [vmem:[%s1296_s3 + $0x38] sm:$0xff]  ;;  %v1045_v14 = vld [vmem:[%s1296_s3 + $0x30] sm:$0xff]  ;;  %v1044_v15 = vld [vmem:[%s1296_s3 + $0x28] sm:$0xff]  ;;  %vm550_vm2 = vcmask 64512   ;;  %s943_s22 = sshll.u32 %s1303_s7, 3 }
   0xe   : > { %s302_s16 = scalar_lea.vmem %s1293_s0, %s941_s11  ;;  %675 = vmatpush.bf16.msra.mxu2 %v1046_v12  ;;  %1047 = vmatpush.bf16.msra.mxu3 %v1046_v12  ;;  %v1043_v16 = vld [vmem:[%s1296_s3 + $0x20] sm:$0xff]  ;;  %v1042_v17 = vld [vmem:[%s1296_s3 + $0x18] sm:$0xff]  ;;  %v1041_v18 = vld [vmem:[%s1296_s3 + $0x10] sm:$0xff]  ;;  %s1255_s25 = scalar_lea.vmem %s1301_s8, %s943_s22 }
   0xf   : > { %v381_v2 = vpack.c.b16 %v379_v1, %v379_v1  ;;  %v1030_v5 = vld [vmem:[%s302_s16] sm:$0xff]  ;;  %v1032_v6 = vld [vmem:[%s302_s16 + $0x10] sm:$0xff]  ;;  %v1031_v7 = vld [vmem:[%s302_s16 + $0x8] sm:$0xff] }
  0x10   : > { %534 = vrot.lane.b32.xlu0 %v1030_v5, %s1075_s17  ;;  %538 = vrot.lane.b32.xlu1 %v1032_v6, %s1075_s17  ;;  %v1033_v8 = vld [vmem:[%s302_s16 + $0x18] sm:$0xff]  ;;  %v1034_v9 = vld [vmem:[%s302_s16 + $0x20] sm:$0xff] }
  0x11   : > { %v410_v3 = vsel %vm408_vm0, %v381_v2, 0  ;;  %542 = vrot.lane.b32.xlu2 %v1034_v9, %s1075_s17  ;;  %v1035_v10 = vld [vmem:[%s302_s16 + $0x28] sm:$0xff]  ;;  %v1036_v11 = vld [vmem:[%s302_s16 + $0x30] sm:$0xff]  ;;  %v1037_v13 = vld [vmem:[%s302_s16 + $0x38] sm:$0xff] }
  0x12   : > { %418 = vmatpush.bf16.msra.mxu0 %v410_v3  ;;  %676 = vmatpush.bf16.msra.mxu2 %v1045_v14  ;;  %v1040_v19 = vld [vmem:[%s1296_s3 + $0x8] sm:$0xff]  ;;  %v533_v20 = vld [vmem:[%s1297_s4] sm:$0xf] }
  0x13   : > { %1048 = vmatpush.bf16.msra.mxu3 %v1045_v14  ;;  %v576_v21 = vsel %vm408_vm0, %v533_v20, 0  ;;  %v1039_v22 = vld [vmem:[%s1296_s3] sm:$0xff] }
  0x14   : > { %585 = vmatpush.bf16.msra.mxu1 %v576_v21  ;;  %v1185_v26 = vld [vmem:[%s1295_s2] ss:$0 sm:$0xff] }
  0x16   : > { %419 = vmatpush.bf16.msra.mxu0 %v1038_v4  ;;  %677 = vmatpush.bf16.msra.mxu2 %v1044_v15 }
  0x17   : > { %1049 = vmatpush.bf16.msra.mxu3 %v1044_v15 }
  0x18   : > { %536 = vrot.lane.b32.xlu0 %v1031_v7, %s1075_s17  ;;  %540 = vrot.lane.b32.xlu1 %v1033_v8, %s1075_s17 }
  0x19   : > { %980 = vmatmul.msk.bf16.vlgmr.msra.gmra.mxu0 %vm383_vm1, %v1030_v5  ;;  %544 = vrot.lane.b32.xlu2 %v1035_v10, %s1075_s17 }
  0x1a   : > { %678 = vmatpush.bf16.msra.mxu2 %v1043_v16 }
  0x1b   : > { %1050 = vmatpush.bf16.msra.mxu3 %v1043_v16 }
  0x1e   : > { %679 = vmatpush.bf16.msra.mxu2 %v1042_v17 }
  0x1f   : > { %1051 = vmatpush.bf16.msra.mxu3 %v1042_v17 }
  0x20   : > { %546 = vrot.lane.b32.xlu0 %v1036_v11, %s1075_s17  ;;  %548 = vrot.lane.b32.xlu1 %v1037_v13, %s1075_s17 }
  0x22   : > { %680 = vmatpush.bf16.msra.mxu2 %v1041_v18 }
  0x23   : > { %1052 = vmatpush.bf16.msra.mxu3 %v1041_v18 }
  0x26   : > { %681 = vmatpush.bf16.msra.mxu2 %v1040_v19 }
  0x27   : > { %1053 = vmatpush.bf16.msra.mxu3 %v1040_v19 }
  0x29   : > { %981 = vmatmul.msk.bf16.gmra.mxu0 %vm383_vm1, %v1031_v7 }
  0x2a   : > { %682 = vmatpush.bf16.msra.mxu2 %v1039_v22 }
  0x2b   : > { %1054 = vmatpush.bf16.msra.mxu3 %v1039_v22 }
  0x39   : > { %982 = vmatmul.msk.bf16.gmra.mxu0 %vm383_vm1, %v1032_v6 }
  0x49   : > { %983 = vmatmul.msk.bf16.gmra.mxu0 %vm383_vm1, %v1033_v8 }
  0x59   : > { %984 = vmatmul.msk.bf16.gmra.mxu0 %vm383_vm1, %v1034_v9 }
  0x69   : > { %985 = vmatmul.msk.bf16.gmra.mxu0 %vm383_vm1, %v1035_v10 }
  0x6b   : > { %v543_v55 = vpop.permute.xlu2 %542 }
  0x73   : > { %v545_v1 = vpop.permute.xlu2 %544 }
  0x79   : > { %986 = vmatmul.msk.bf16.gmra.mxu0 %vm383_vm1, %v1036_v11 }
  0x82   : > { %v535_v23 = vpop.permute.xlu0 %534  ;;  %v539_v35 = vpop.permute.xlu1 %538 }
  0x83   : > { %988 = vmatmul.msk.bf16.vlgmr.msra.gmra.mxu1 %vm550_vm2, %v535_v23 }
  0x89   : > { %987 = vmatmul.msk.bf16.gmra.mxu0 %vm383_vm1, %v1037_v13 }
  0x8a   : > { %v537_v24 = vpop.permute.xlu0 %536  ;;  %v541_v45 = vpop.permute.xlu1 %540 }
  0x92   : > { %v547_v11 = vpop.permute.xlu0 %546  ;;  %v549_v21 = vpop.permute.xlu1 %548 }
  0x93   : > { %989 = vmatmul.msk.bf16.gmra.mxu1 %vm550_vm2, %v537_v24 }
  0x96   : > { %v421_v25 = vpop.f32.mrf.mxu0 }
  0x97   : > { %v422_v27 = vadd.f32 %v1185_v26, %v421_v25 }
  0x99   : > { %v477_v29 = vmul.f32 0.01, %v422_v27  ;;  %vm461_vm3 = vcmp.gt.f32.partialorder %v422_v27, 0.0 }
  0x9b   : > { %v493_v32 = vsel %vm461_vm3, %v422_v27, %v477_v29 }
  0x9e   : > { %v423_v28 = vpop.f32.mrf.mxu0 }
  0x9f   : > { %v424_v30 = vadd.f32 %v1185_v26, %v423_v28 }
  0xa1   : > { %v478_v31 = vmul.f32 0.01, %v424_v30  ;;  %vm462_vm4 = vcmp.gt.f32.partialorder %v424_v30, 0.0 }
  0xa3   : > { %v494_v33 = vsel %vm462_vm4, %v424_v30, %v478_v31  ;;  %990 = vmatmul.msk.bf16.gmra.mxu1 %vm550_vm2, %v539_v35 }
  0xa4   : > { %v509_v34 = vpack.c.bf16 %v494_v33, %v493_v32 }
  0xa6   : > { %v426_v36 = vpop.f32.mrf.mxu0  ;;  %683 = vmatmul.bf16.vlgmr.msra.gmra.mxu2 %v509_v34 }
  0xa7   : > { %v427_v37 = vadd.f32 %v1185_v26, %v426_v36 }
  0xa9   : > { %v479_v39 = vmul.f32 0.01, %v427_v37  ;;  %vm463_vm5 = vcmp.gt.f32.partialorder %v427_v37, 0.0 }
  0xab   : > { %v495_v42 = vsel %vm463_vm5, %v427_v37, %v479_v39 }
  0xae   : > { %v428_v38 = vpop.f32.mrf.mxu0 }
  0xaf   : > { %v429_v40 = vadd.f32 %v1185_v26, %v428_v38 }
  0xb1   : > { %v480_v41 = vmul.f32 0.01, %v429_v40  ;;  %vm464_vm6 = vcmp.gt.f32.partialorder %v429_v40, 0.0 }
  0xb3   : > { %v496_v43 = vsel %vm464_vm6, %v429_v40, %v480_v41  ;;  %991 = vmatmul.msk.bf16.gmra.mxu1 %vm550_vm2, %v541_v45 }
  0xb4   : > { %v510_v44 = vpack.c.bf16 %v496_v43, %v495_v42 }
  0xb6   : > { %v431_v46 = vpop.f32.mrf.mxu0  ;;  %688 = vmatmul.bf16.gmra.mxu2 %v510_v44  ;;  %v1213_v44 = vld [vmem:[%s1298_s5] ss:$0 sm:$0xff] }
  0xb7   : > { %v432_v47 = vadd.f32 %v1185_v26, %v431_v46 }
  0xb9   : > { %v481_v49 = vmul.f32 0.01, %v432_v47  ;;  %vm465_vm7 = vcmp.gt.f32.partialorder %v432_v47, 0.0 }
  0xbb   : > { %v497_v52 = vsel %vm465_vm7, %v432_v47, %v481_v49 }
  0xbe   : > { %v433_v48 = vpop.f32.mrf.mxu0 }
  0xbf   : > { %v434_v50 = vadd.f32 %v1185_v26, %v433_v48 }
  0xc1   : > { %v482_v51 = vmul.f32 0.01, %v434_v50  ;;  %vm466_vm8 = vcmp.gt.f32.partialorder %v434_v50, 0.0 }
  0xc3   : > { %v498_v53 = vsel %vm466_vm8, %v434_v50, %v482_v51  ;;  %992 = vmatmul.msk.bf16.gmra.mxu1 %vm550_vm2, %v543_v55 }
  0xc4   : > { %v511_v54 = vpack.c.bf16 %v498_v53, %v497_v52 }
  0xc6   : > { %v436_v56 = vpop.f32.mrf.mxu0  ;;  %693 = vmatmul.bf16.gmra.mxu2 %v511_v54 }
  0xc7   : > { %v437_v57 = vadd.f32 %v1185_v26, %v436_v56 }
  0xc9   : > { %v483_v59 = vmul.f32 0.01, %v437_v57  ;;  %vm467_vm9 = vcmp.gt.f32.partialorder %v437_v57, 0.0 }
  0xcb   : > { %v499_v62 = vsel %vm467_vm9, %v437_v57, %v483_v59 }
  0xce   : > { %v438_v58 = vpop.f32.mrf.mxu0 }
  0xcf   : > { %v439_v60 = vadd.f32 %v1185_v26, %v438_v58 }
  0xd1   : > { %v484_v61 = vmul.f32 0.01, %v439_v60  ;;  %vm468_vm10 = vcmp.gt.f32.partialorder %v439_v60, 0.0 }
  0xd3   : > { %v500_v63 = vsel %vm468_vm10, %v439_v60, %v484_v61  ;;  %993 = vmatmul.msk.bf16.gmra.mxu1 %vm550_vm2, %v545_v1 }
  0xd4   : > { %v512_v0 = vpack.c.bf16 %v500_v63, %v499_v62 }
  0xd6   : > { %v441_v2 = vpop.f32.mrf.mxu0  ;;  %698 = vmatmul.bf16.gmra.mxu2 %v512_v0 }
  0xd7   : > { %v442_v3 = vadd.f32 %v1185_v26, %v441_v2 }
  0xd9   : > { %v485_v5 = vmul.f32 0.01, %v442_v3  ;;  %vm469_vm11 = vcmp.gt.f32.partialorder %v442_v3, 0.0 }
  0xdb   : > { %v501_v8 = vsel %vm469_vm11, %v442_v3, %v485_v5 }
  0xde   : > { %v443_v4 = vpop.f32.mrf.mxu0 }
  0xdf   : > { %v444_v6 = vadd.f32 %v1185_v26, %v443_v4 }
  0xe1   : > { %v486_v7 = vmul.f32 0.01, %v444_v6  ;;  %vm470_vm12 = vcmp.gt.f32.partialorder %v444_v6, 0.0 }
  0xe3   : > { %v502_v9 = vsel %vm470_vm12, %v444_v6, %v486_v7  ;;  %994 = vmatmul.msk.bf16.gmra.mxu1 %vm550_vm2, %v547_v11 }
  0xe4   : > { %v513_v10 = vpack.c.bf16 %v502_v9, %v501_v8 }
  0xe6   : > { %v446_v12 = vpop.f32.mrf.mxu0  ;;  %703 = vmatmul.bf16.gmra.mxu2 %v513_v10 }
  0xe7   : > { %v447_v13 = vadd.f32 %v1185_v26, %v446_v12 }
  0xe9   : > { %v487_v15 = vmul.f32 0.01, %v447_v13  ;;  %vm471_vm13 = vcmp.gt.f32.partialorder %v447_v13, 0.0 }
  0xeb   : > { %v503_v18 = vsel %vm471_vm13, %v447_v13, %v487_v15 }
  0xee   : > { %v448_v14 = vpop.f32.mrf.mxu0 }
  0xef   : > { %v449_v16 = vadd.f32 %v1185_v26, %v448_v14 }
  0xf1   : > { %v488_v17 = vmul.f32 0.01, %v449_v16  ;;  %vm472_vm14 = vcmp.gt.f32.partialorder %v449_v16, 0.0 }
  0xf3   : > { %v504_v19 = vsel %vm472_vm14, %v449_v16, %v488_v17  ;;  %995 = vmatmul.msk.bf16.gmra.mxu1 %vm550_vm2, %v549_v21 }
  0xf4   : > { %v514_v20 = vpack.c.bf16 %v504_v19, %v503_v18 }
  0xf6   : > { %v451_v22 = vpop.f32.mrf.mxu0  ;;  %708 = vmatmul.bf16.gmra.mxu2 %v514_v20 }
  0xf7   : > { %v452_v23 = vadd.f32 %v1185_v26, %v451_v22 }
  0xf9   : > { %v489_v25 = vmul.f32 0.01, %v452_v23  ;;  %vm473_vm15 = vcmp.gt.f32.partialorder %v452_v23, 0.0 }
  0xfb   : > { %v505_v29 = vsel %vm473_vm15, %v452_v23, %v489_v25 }
  0xfe   : > { %v453_v24 = vpop.f32.mrf.mxu0 }
  0xff   : > { %v454_v27 = vadd.f32 %v1185_v26, %v453_v24 }
 0x100   : > { %v587_v34 = vpop.f32.mrf.mxu1 }
 0x101   : > { %v490_v28 = vmul.f32 0.01, %v454_v27  ;;  %vm474_vm0 = vcmp.gt.f32.partialorder %v454_v27, 0.0 }
 0x103   : > { %v506_v30 = vsel %vm474_vm0, %v454_v27, %v490_v28 }
 0x104   : > { %v515_v31 = vpack.c.bf16 %v506_v30, %v505_v29 }
 0x106   : > { %v456_v32 = vpop.f32.mrf.mxu0  ;;  %713 = vmatmul.bf16.vlgmr.msra.gmra.mxu3 %v515_v31 }
 0x107   : > { %v457_v33 = vadd.f32 %v1185_v26, %v456_v32 }
 0x108   : > { %v589_v42 = vpop.f32.mrf.mxu1 }
 0x109   : > { %v491_v36 = vmul.f32 0.01, %v457_v33  ;;  %vm475_vm1 = vcmp.gt.f32.partialorder %v457_v33, 0.0 }
 0x10b   : > { %v507_v39 = vsel %vm475_vm1, %v457_v33, %v491_v36 }
 0x10e   : > { %v458_v35 = vpop.f32.mrf.mxu0 }
 0x10f   : > { %v459_v37 = vadd.f32 %v1185_v26, %v458_v35  ;;  %v1219_v26 = vld [vmem:[%s1299_s6] ss:$0 sm:$0xff] }
 0x110   : > { %v592_v43 = vpop.f32.mrf.mxu1 }
 0x111   : > { %v492_v38 = vmul.f32 0.01, %v459_v37  ;;  %vm476_vm2 = vcmp.gt.f32.partialorder %v459_v37, 0.0 }
 0x113   : > { %v508_v40 = vsel %vm476_vm2, %v459_v37, %v492_v38  ;;  %vm862_vm2 = vcmask 7168  }
 0x114   : > { %v516_v41 = vpack.c.bf16 %v508_v40, %v507_v39 }
 0x116   : > { %718 = vmatmul.bf16.gmra.mxu3 %v516_v41 }
 0x118   : > { %v594_v46 = vpop.f32.mrf.mxu1 }
 0x120   : > { %v597_v54 = vpop.f32.mrf.mxu1 }
 0x128   : > { %v599_v62 = vpop.f32.mrf.mxu1 }
 0x129   : > { %v684_v45 = vpop.f32.mrf.mxu2 }
 0x12a   : > { %v685_v47 = vadd.f32 %v684_v45, %v587_v34 }
 0x12c   : > { %v728_v48 = vadd.f32 %v1213_v44, %v685_v47 }
 0x12e   : > { %vm744_vm3 = vcmp.gt.f32.partialorder %v728_v48, 0.0  ;;  %v760_v49 = vmul.f32 0.01, %v728_v48 }
 0x130   : > { %v776_v50 = vsel %vm744_vm3, %v728_v48, %v760_v49  ;;  %v602_v6 = vpop.f32.mrf.mxu1 }
 0x131   : > { %v686_v51 = vpop.f32.mrf.mxu2  ;;  %v796_v52 = vmul.f32 %v1219_v26, %v776_v50 }
 0x132   : > { %v687_v53 = vadd.f32 %v686_v51, %v589_v42 }
 0x133   : > { %812 = vadd.xlane.f32.xlu2 %v796_v52 }
 0x134   : > { %v729_v55 = vadd.f32 %v1213_v44, %v687_v53 }
 0x136   : > { %vm745_vm4 = vcmp.gt.f32.partialorder %v729_v55, 0.0  ;;  %v761_v56 = vmul.f32 0.01, %v729_v55 }
 0x138   : > { %v777_v57 = vsel %vm745_vm4, %v729_v55, %v761_v56  ;;  %v604_v16 = vpop.f32.mrf.mxu1 }
 0x139   : > { %v689_v58 = vpop.f32.mrf.mxu2  ;;  %v797_v59 = vmul.f32 %v1219_v26, %v777_v57 }
 0x13a   : > { %v690_v60 = vadd.f32 %v689_v58, %v592_v43 }
 0x13b   : > { %814 = vadd.xlane.f32.xlu0 %v797_v59 }
 0x13c   : > { %v730_v61 = vadd.f32 %v1213_v44, %v690_v60 }
 0x13e   : > { %vm746_vm5 = vcmp.gt.f32.partialorder %v730_v61, 0.0  ;;  %v762_v63 = vmul.f32 0.01, %v730_v61 }
 0x140   : > { %v778_v0 = vsel %vm746_vm5, %v730_v61, %v762_v63  ;;  %v607_v24 = vpop.f32.mrf.mxu1 }
 0x141   : > { %v691_v1 = vpop.f32.mrf.mxu2  ;;  %v798_v2 = vmul.f32 %v1219_v26, %v778_v0 }
 0x142   : > { %v692_v3 = vadd.f32 %v691_v1, %v594_v46 }
 0x143   : > { %816 = vadd.xlane.f32.xlu1 %v798_v2 }
 0x144   : > { %v731_v4 = vadd.f32 %v1213_v44, %v692_v3 }
 0x146   : > { %vm747_vm6 = vcmp.gt.f32.partialorder %v731_v4, 0.0  ;;  %v763_v5 = vmul.f32 0.01, %v731_v4 }
 0x148   : > { %v779_v7 = vsel %vm747_vm6, %v731_v4, %v763_v5  ;;  %v609_v33 = vpop.f32.mrf.mxu1 }
 0x149   : > { %v694_v8 = vpop.f32.mrf.mxu2  ;;  %v799_v9 = vmul.f32 %v1219_v26, %v779_v7 }
 0x14a   : > { %v695_v10 = vadd.f32 %v694_v8, %v597_v54 }
 0x14b   : > { %818 = vadd.xlane.f32.xlu2 %v799_v9 }
 0x14c   : > { %v732_v11 = vadd.f32 %v1213_v44, %v695_v10 }
 0x14e   : > { %vm748_vm7 = vcmp.gt.f32.partialorder %v732_v11, 0.0  ;;  %v764_v12 = vmul.f32 0.01, %v732_v11 }
 0x150   : > { %v780_v13 = vsel %vm748_vm7, %v732_v11, %v764_v12  ;;  %v612_v41 = vpop.f32.mrf.mxu1 }
 0x151   : > { %v696_v14 = vpop.f32.mrf.mxu2  ;;  %v800_v15 = vmul.f32 %v1219_v26, %v780_v13 }
 0x152   : > { %v697_v17 = vadd.f32 %v696_v14, %v599_v62 }
 0x153   : > { %820 = vadd.xlane.f32.xlu2 %v800_v15 }
 0x154   : > { %v733_v18 = vadd.f32 %v1213_v44, %v697_v17 }
 0x156   : > { %vm749_vm8 = vcmp.gt.f32.partialorder %v733_v18, 0.0  ;;  %v765_v19 = vmul.f32 0.01, %v733_v18 }
 0x158   : > { %v781_v20 = vsel %vm749_vm8, %v733_v18, %v765_v19  ;;  %v614_v50 = vpop.f32.mrf.mxu1 }
 0x159   : > { %v699_v21 = vpop.f32.mrf.mxu2  ;;  %v801_v22 = vmul.f32 %v1219_v26, %v781_v20 }
 0x15a   : > { %v700_v23 = vadd.f32 %v699_v21, %v602_v6 }
 0x15b   : > { %822 = vadd.xlane.f32.xlu0 %v801_v22 }
 0x15c   : > { %v734_v25 = vadd.f32 %v1213_v44, %v700_v23 }
 0x15e   : > { %vm750_vm9 = vcmp.gt.f32.partialorder %v734_v25, 0.0  ;;  %v766_v27 = vmul.f32 0.01, %v734_v25 }
 0x160   : > { %v782_v28 = vsel %vm750_vm9, %v734_v25, %v766_v27  ;;  %v617_v60 = vpop.f32.mrf.mxu1  ;;  %v845_v25 = vstv %s844_s21 }
 0x161   : > { %v701_v29 = vpop.f32.mrf.mxu2  ;;  %v802_v30 = vmul.f32 %v1219_v26, %v782_v28 }
 0x162   : > { %v702_v31 = vadd.f32 %v701_v29, %v604_v16 }
 0x163   : > { %824 = vadd.xlane.f32.xlu1 %v802_v30 }
 0x164   : > { %v735_v32 = vadd.f32 %v1213_v44, %v702_v31 }
 0x166   : > { %vm751_vm10 = vcmp.gt.f32.partialorder %v735_v32, 0.0  ;;  %v767_v34 = vmul.f32 0.01, %v735_v32 }
 0x168   : > { %v783_v35 = vsel %vm751_vm10, %v735_v32, %v767_v34  ;;  %v619_v4 = vpop.f32.mrf.mxu1 }
 0x169   : > { %v704_v36 = vpop.f32.mrf.mxu2  ;;  %v803_v37 = vmul.f32 %v1219_v26, %v783_v35 }
 0x16a   : > { %v705_v38 = vadd.f32 %v704_v36, %v607_v24 }
 0x16b   : > { %826 = vadd.xlane.f32.xlu2 %v803_v37 }
 0x16c   : > { %v736_v39 = vadd.f32 %v1213_v44, %v705_v38 }
 0x16e   : > { %vm752_vm11 = vcmp.gt.f32.partialorder %v736_v39, 0.0  ;;  %v768_v40 = vmul.f32 0.01, %v736_v39 }
 0x170   : > { %v784_v42 = vsel %vm752_vm11, %v736_v39, %v768_v40  ;;  %v622_v12 = vpop.f32.mrf.mxu1 }
 0x171   : > { %v706_v43 = vpop.f32.mrf.mxu2  ;;  %v804_v45 = vmul.f32 %v1219_v26, %v784_v42 }
 0x172   : > { %v707_v46 = vadd.f32 %v706_v43, %v609_v33 }
 0x173   : > { %828 = vadd.xlane.f32.xlu0 %v804_v45 }
 0x174   : > { %v737_v47 = vadd.f32 %v1213_v44, %v707_v46 }
 0x176   : > { %vm753_vm12 = vcmp.gt.f32.partialorder %v737_v47, 0.0  ;;  %v769_v48 = vmul.f32 0.01, %v737_v47 }
 0x178   : > { %v785_v49 = vsel %vm753_vm12, %v737_v47, %v769_v48  ;;  %v624_v20 = vpop.f32.mrf.mxu1 }
 0x179   : > { %v709_v51 = vpop.f32.mrf.mxu2  ;;  %v805_v52 = vmul.f32 %v1219_v26, %v785_v49 }
 0x17a   : > { %v710_v53 = vadd.f32 %v709_v51, %v612_v41 }
 0x17b   : > { %830 = vadd.xlane.f32.xlu1 %v805_v52 }
 0x17c   : > { %v738_v54 = vadd.f32 %v1213_v44, %v710_v53 }
 0x17e   : > { %vm754_vm13 = vcmp.gt.f32.partialorder %v738_v54, 0.0  ;;  %v770_v55 = vmul.f32 0.01, %v738_v54 }
 0x180   : > { %v786_v56 = vsel %vm754_vm13, %v738_v54, %v770_v55 }
 0x181   : > { %v711_v57 = vpop.f32.mrf.mxu2  ;;  %v806_v58 = vmul.f32 %v1219_v26, %v786_v56 }
 0x182   : > { %v712_v59 = vadd.f32 %v711_v57, %v614_v50 }
 0x183   : > { %832 = vadd.xlane.f32.xlu2 %v806_v58 }
 0x184   : > { %v739_v61 = vadd.f32 %v1213_v44, %v712_v59 }
 0x186   : > { %vm755_vm14 = vcmp.gt.f32.partialorder %v739_v61, 0.0  ;;  %v771_v62 = vmul.f32 0.01, %v739_v61 }
 0x188   : > { %v787_v63 = vsel %vm755_vm14, %v739_v61, %v771_v62 }
 0x189   : > { %v714_v0 = vpop.f32.mrf.mxu3  ;;  %v807_v1 = vmul.f32 %v1219_v26, %v787_v63 }
 0x18a   : > { %v715_v2 = vadd.f32 %v714_v0, %v617_v60 }
 0x18b   : > { %834 = vadd.xlane.f32.xlu0 %v807_v1 }
 0x18c   : > { %v740_v3 = vadd.f32 %v1213_v44, %v715_v2 }
 0x18e   : > { %vm756_vm15 = vcmp.gt.f32.partialorder %v740_v3, 0.0  ;;  %v772_v5 = vmul.f32 0.01, %v740_v3 }
 0x190   : > { %v788_v6 = vsel %vm756_vm15, %v740_v3, %v772_v5 }
 0x191   : > { %v716_v7 = vpop.f32.mrf.mxu3  ;;  %v808_v8 = vmul.f32 %v1219_v26, %v788_v6 }
 0x192   : > { %v717_v9 = vadd.f32 %v716_v7, %v619_v4 }
 0x193   : > { %836 = vadd.xlane.f32.xlu1 %v808_v8 }
 0x194   : > { %v741_v10 = vadd.f32 %v1213_v44, %v717_v9 }
 0x196   : > { %vm757_vm0 = vcmp.gt.f32.partialorder %v741_v10, 0.0  ;;  %v773_v11 = vmul.f32 0.01, %v741_v10 }
 0x198   : > { %v789_v13 = vsel %vm757_vm0, %v741_v10, %v773_v11 }
 0x199   : > { %v719_v14 = vpop.f32.mrf.mxu3  ;;  %v809_v15 = vmul.f32 %v1219_v26, %v789_v13 }
 0x19a   : > { %v720_v16 = vadd.f32 %v719_v14, %v622_v12 }
 0x19b   : > { %838 = vadd.xlane.f32.xlu2 %v809_v15 }
 0x19c   : > { %v742_v17 = vadd.f32 %v1213_v44, %v720_v16 }
 0x19e   : > { %vm758_vm1 = vcmp.gt.f32.partialorder %v742_v17, 0.0  ;;  %v774_v18 = vmul.f32 0.01, %v742_v17 }
 0x1a0   : > { %v790_v19 = vsel %vm758_vm1, %v742_v17, %v774_v18 }
 0x1a1   : > { %v721_v21 = vpop.f32.mrf.mxu3  ;;  %v810_v22 = vmul.f32 %v1219_v26, %v790_v19 }
 0x1a2   : > { %v722_v23 = vadd.f32 %v721_v21, %v624_v20 }
 0x1a3   : > { %840 = vadd.xlane.f32.xlu0 %v810_v22 }
 0x1a4   : > { %v743_v24 = vadd.f32 %v1213_v44, %v722_v23 }
 0x1a6   : > { %v813_v27 = vpop.xlane.xlu2 %812  ;;  %vm759_vm3 = vcmp.gt.f32.partialorder %v743_v24, 0.0  ;;  %v775_v28 = vmul.f32 0.01, %v743_v24 }
 0x1a7   : > { %v846_v29 = vadd.f32 %v845_v25, %v813_v27 }
 0x1a8   : > { %v791_v30 = vsel %vm759_vm3, %v743_v24, %v775_v28 }
 0x1a9   : > { %863 = vst.msk [vmem:[%s1255_s25] sm:$0xff] %vm862_vm2, %v846_v29  ;;  %v811_v44 = vmul.f32 %v1219_v26, %v791_v30 }
 0x1ab   : > { %842 = vadd.xlane.f32.xlu1 %v811_v44 }
 0x1ae   : > { %v815_v31 = vpop.xlane.xlu0 %814 }
 0x1af   : > { %v847_v32 = vadd.f32 %v845_v25, %v815_v31 }
 0x1b1   : > { %864 = vst.msk [vmem:[%s1255_s25 + $0x8] sm:$0xff] %vm862_vm2, %v847_v32 }
 0x1b6   : > { %v817_v33 = vpop.xlane.xlu1 %816 }
 0x1b7   : > { %v848_v34 = vadd.f32 %v845_v25, %v817_v33 }
 0x1b9   : > { %865 = vst.msk [vmem:[%s1255_s25 + $0x10] sm:$0xff] %vm862_vm2, %v848_v34 }
 0x1be   : > { %v819_v35 = vpop.xlane.xlu2 %818 }
 0x1bf   : > { %v849_v36 = vadd.f32 %v845_v25, %v819_v35 }
 0x1c1   : > { %866 = vst.msk [vmem:[%s1255_s25 + $0x18] sm:$0xff] %vm862_vm2, %v849_v36 }
 0x1c6   : > { %v821_v37 = vpop.xlane.xlu2 %820 }
 0x1c7   : > { %v850_v38 = vadd.f32 %v845_v25, %v821_v37 }
 0x1c9   : > { %867 = vst.msk [vmem:[%s1255_s25 + $0x20] sm:$0xff] %vm862_vm2, %v850_v38 }
 0x1ce   : > { %v823_v26 = vpop.xlane.xlu0 %822 }
 0x1cf   : > { %v851_v39 = vadd.f32 %v845_v25, %v823_v26 }
 0x1d1   : > { %868 = vst.msk [vmem:[%s1255_s25 + $0x28] sm:$0xff] %vm862_vm2, %v851_v39 }
 0x1d6   : > { %v825_v40 = vpop.xlane.xlu1 %824 }
 0x1d7   : > { %v852_v41 = vadd.f32 %v845_v25, %v825_v40 }
 0x1d9   : > { %869 = vst.msk [vmem:[%s1255_s25 + $0x30] sm:$0xff] %vm862_vm2, %v852_v41 }
 0x1de   : > { %v827_v42 = vpop.xlane.xlu2 %826 }
 0x1df   : > { %v853_v43 = vadd.f32 %v845_v25, %v827_v42 }
 0x1e1   : > { %870 = vst.msk [vmem:[%s1255_s25 + $0x38] sm:$0xff] %vm862_vm2, %v853_v43 }
 0x1e6   : > { %v829_v45 = vpop.xlane.xlu0 %828 }
 0x1e7   : > { %v854_v46 = vadd.f32 %v845_v25, %v829_v45 }
 0x1e9   : > { %871 = vst.msk [vmem:[%s1255_s25 + $0x40] sm:$0xff] %vm862_vm2, %v854_v46 }
 0x1ee   : > { %v831_v47 = vpop.xlane.xlu1 %830 }
 0x1ef   : > { %v855_v48 = vadd.f32 %v845_v25, %v831_v47 }
 0x1f1   : > { %872 = vst.msk [vmem:[%s1255_s25 + $0x48] sm:$0xff] %vm862_vm2, %v855_v48 }
 0x1f6   : > { %v833_v49 = vpop.xlane.xlu2 %832 }
 0x1f7   : > { %v856_v50 = vadd.f32 %v845_v25, %v833_v49 }
 0x1f9   : > { %873 = vst.msk [vmem:[%s1255_s25 + $0x50] sm:$0xff] %vm862_vm2, %v856_v50 }
 0x1fe   : > { %v835_v51 = vpop.xlane.xlu0 %834 }
 0x1ff   : > { %v857_v52 = vadd.f32 %v845_v25, %v835_v51 }
 0x201   : > { %874 = vst.msk [vmem:[%s1255_s25 + $0x58] sm:$0xff] %vm862_vm2, %v857_v52 }
 0x206   : > { %v837_v53 = vpop.xlane.xlu1 %836 }
 0x207   : > { %v858_v54 = vadd.f32 %v845_v25, %v837_v53 }
 0x209   : > { %875 = vst.msk [vmem:[%s1255_s25 + $0x60] sm:$0xff] %vm862_vm2, %v858_v54 }
 0x20e   : > { %v839_v55 = vpop.xlane.xlu2 %838 }
 0x20f   : > { %v859_v56 = vadd.f32 %v845_v25, %v839_v55 }
 0x211   : > { %876 = vst.msk [vmem:[%s1255_s25 + $0x68] sm:$0xff] %vm862_vm2, %v859_v56 }
 0x216   : > { %v841_v57 = vpop.xlane.xlu0 %840 }
 0x217   : > { %v860_v58 = vadd.f32 %v845_v25, %v841_v57 }
 0x219   : > { %877 = vst.msk [vmem:[%s1255_s25 + $0x70] sm:$0xff] %vm862_vm2, %v860_v58 }
 0x21e   : > { %v843_v59 = vpop.xlane.xlu1 %842 }
 0x21f   : > { %v861_v60 = vadd.f32 %v845_v25, %v843_v59 }
 0x221   : > { %878 = vst.msk [vmem:[%s1255_s25 + $0x78] sm:$0xff] %vm862_vm2, %v861_v60 }
 0x222 PF: > { %s19_s29 = sadd.s32 1, %s1073_s29  }
 0x223   : > { %p16_p4 = scmp.ge.s32.totalorder %s19_s29, 4  }
 0x225   :  { %18 = sbr.rel (!%p16_p4) target bundleno = 2 (0x2), region = 82 }

</bundles_post_ra>
